<compile_context>
chip_gen: v5e
topology: v5e:2x2
jax: 0.10.0
libtpu: 0.0.40
codegen_flags: <defaults>
</compile_context>

<pallas_src>
import functools

import jax
import jax.numpy as jnp
from jax.experimental import pallas as pl
from jax.experimental.pallas import tpu as pltpu


def _round_up(x, m):
    return ((x + m - 1) // m) * m


def mlp2_kernel(x_ref, w1_ref, b1_ref, w2_ref, b2_ref, o_ref, *, tb, seq_len):
    # x_ref: (TB*L, E_pad) -- TB batch rows, each with L sequence positions,
    # flattened into the matmul M dimension so a single dot fills the MXU.
    x2d = x_ref[...]

    # fc1 + bias + ReLU (dropout is identity at inference time -> no-op).
    h = jnp.dot(x2d, w1_ref[...], preferred_element_type=jnp.float32)
    h = jnp.maximum(h + b1_ref[...], 0.0)                      # (TB*L, H_pad)

    # max_pool1d over the full sequence == max over the L axis.
    pooled = jnp.max(h.reshape(tb, seq_len, h.shape[-1]), axis=1)  # (TB, H_pad)

    # fc2 over the whole batch tile at once (M = TB, not 1).
    out = jnp.dot(pooled, w2_ref[...], preferred_element_type=jnp.float32)
    o_ref[...] = (out + b2_ref[...]).astype(o_ref.dtype)       # (TB, C_pad)


def mlp2_forward(x, w1, b1, w2, b2, *, batch_tile=None):
    """x: (B, L, E) float32. w1: (E, H), b1: (H,), w2: (H, C), b2: (C,)."""
    B, L, E = x.shape
    H = w1.shape[1]
    C = w2.shape[1]

    # Lane-dense padding (multiples of 128 on the last axis) and a sublane
    # aligned batch tile (multiple of 8 rows).
    E_pad = _round_up(E, 128)
    H_pad = _round_up(H, 128)
    C_pad = _round_up(C, 128)
    if batch_tile is None:
        batch_tile = min(_round_up(B, 8), 64)
    TB = batch_tile
    B_pad = _round_up(B, TB)
    n_steps = B_pad // TB

    # Zero padding: padded E lanes contribute 0 to fc1, padded H lanes are
    # 0 after bias+ReLU+max and hit zero rows of w2, padded C lanes and padded
    # batch rows are sliced off below -> semantics unchanged.
    xp = jnp.zeros((B_pad, L, E_pad), x.dtype).at[:B, :, :E].set(x)
    w1p = jnp.zeros((E_pad, H_pad), w1.dtype).at[:E, :H].set(w1)
    b1p = jnp.zeros((1, H_pad), b1.dtype).at[0, :H].set(b1)
    w2p = jnp.zeros((H_pad, C_pad), w2.dtype).at[:H, :C].set(w2)
    b2p = jnp.zeros((1, C_pad), b2.dtype).at[0, :C].set(b2)

    # Fold (batch, seq) into the matmul M dimension.
    x2d = xp.reshape(B_pad * L, E_pad)

    kernel = functools.partial(mlp2_kernel, tb=TB, seq_len=L)
    out = pl.pallas_call(
        kernel,
        out_shape=jax.ShapeDtypeStruct((B_pad, C_pad), x.dtype),
        grid_spec=pltpu.PrefetchScalarGridSpec(
            num_scalar_prefetch=0,
            grid=(n_steps,),
            in_specs=[
                pl.BlockSpec((TB * L, E_pad), lambda i: (i, 0)),  # x batch tile
                pl.BlockSpec((E_pad, H_pad), lambda i: (0, 0)),   # w1 (resident)
                pl.BlockSpec((1, H_pad), lambda i: (0, 0)),       # b1
                pl.BlockSpec((H_pad, C_pad), lambda i: (0, 0)),   # w2 (resident)
                pl.BlockSpec((1, C_pad), lambda i: (0, 0)),       # b2
            ],
            out_specs=pl.BlockSpec((TB, C_pad), lambda i: (i, 0)),
        ),
        compiler_params=pltpu.CompilerParams(
            dimension_semantics=("parallel",)),
    )(x2d, w1p, b1p, w2p, b2p)

    return out[:B, :C]


def init_params(key, embed_dim=50, hidden_dim=100, num_classes=2):
    """Deterministic PyTorch-Linear-style init (uniform +/- 1/sqrt(fan_in))."""
    k1, k2, k3, k4 = jax.random.split(key, 4)
    lim1 = 1.0 / jnp.sqrt(embed_dim)
    lim2 = 1.0 / jnp.sqrt(hidden_dim)
    # Weights stored transposed to (in, out) for the x @ W convention.
    w1 = jax.random.uniform(k1, (embed_dim, hidden_dim), jnp.float32, -lim1, lim1)
    b1 = jax.random.uniform(k2, (hidden_dim,), jnp.float32, -lim1, lim1)
    w2 = jax.random.uniform(k3, (hidden_dim, num_classes), jnp.float32, -lim2, lim2)
    b2 = jax.random.uniform(k4, (num_classes,), jnp.float32, -lim2, lim2)
    return w1, b1, w2, b2


def mlp2_reference(x, w1, b1, w2, b2):
    h = jnp.maximum(jnp.einsum("ble,eh->blh", x, w1) + b1, 0.0)
    pooled = jnp.max(h, axis=1)          # max over the sequence axis
    return pooled @ w2 + b2


if __name__ == "__main__":
    key = jax.random.PRNGKey(0)
    kx, kp = jax.random.split(key)

    B, L, E, H, C = 2, 8, 50, 100, 2
    x = jax.random.normal(kx, (B, L, E), jnp.float32)
    w1, b1, w2, b2 = init_params(kp, embed_dim=E, hidden_dim=H, num_classes=C)

    out = mlp2_forward(x, w1, b1, w2, b2)
    out = jax.block_until_ready(out)

    ref = mlp2_reference(x, w1, b1, w2, b2)
    assert out.shape == (B, C), out.shape
    assert jnp.allclose(out, ref, atol=1e-4, rtol=1e-4), "mismatch vs reference"

    print("KERNEL_OK")
</pallas_src>

<mosaic_0001>
module attributes {stable_mosaic.version = 11 : i64} {
  func.func @mlp2_kernel(%arg0: i32, %arg1: memref<64x128xf32, #tpu.memory_space<vmem>>, %arg2: memref<128x128xf32, #tpu.memory_space<vmem>>, %arg3: memref<1x128xf32, #tpu.memory_space<vmem>>, %arg4: memref<128x128xf32, #tpu.memory_space<vmem>>, %arg5: memref<1x128xf32, #tpu.memory_space<vmem>>, %arg6: memref<8x128xf32, #tpu.memory_space<vmem>>) attributes {dimension_semantics = [#tpu.dimension_semantics<parallel>], iteration_bounds = array<i64: 1>, scalar_prefetch = 0 : i64, scratch_operands = 0 : i64, tpu.core_type = #tpu.core_type<tc>, window_params = [{transform_indices = @transform_0, window_bounds = array<i64: 64, 128>}, {pipeline_mode = #tpu.pipeline_mode<synchronous>, transform_indices = @transform_1, window_bounds = array<i64: 128, 128>}, {pipeline_mode = #tpu.pipeline_mode<synchronous>, transform_indices = @transform_2, window_bounds = array<i64: 1, 128>}, {pipeline_mode = #tpu.pipeline_mode<synchronous>, transform_indices = @transform_3, window_bounds = array<i64: 128, 128>}, {pipeline_mode = #tpu.pipeline_mode<synchronous>, transform_indices = @transform_4, window_bounds = array<i64: 1, 128>}, {transform_indices = @transform_5, window_bounds = array<i64: 8, 128>}]} {
    %c0 = arith.constant 0 : index
    %c0_0 = arith.constant 0 : index
    %0 = vector.load %arg1[%c0, %c0_0] : memref<64x128xf32, #tpu.memory_space<vmem>>, vector<64x128xf32>
    %c0_1 = arith.constant 0 : index
    %c0_2 = arith.constant 0 : index
    %1 = vector.load %arg2[%c0_1, %c0_2] : memref<128x128xf32, #tpu.memory_space<vmem>>, vector<128x128xf32>
    %cst = arith.constant dense<0.000000e+00> : vector<64x128xf32>
    %2 = tpu.matmul %0, %1, %cst {dimension_numbers = #tpu.dot_dimension_numbers<[1], [0], [0], [1], [0, 0, 1, 1], [], []>} : vector<64x128xf32>, vector<128x128xf32>, vector<64x128xf32> -> vector<64x128xf32>
    %c0_3 = arith.constant 0 : index
    %c0_4 = arith.constant 0 : index
    %3 = vector.load %arg3[%c0_3, %c0_4] : memref<1x128xf32, #tpu.memory_space<vmem>>, vector<1x128xf32>
    %4 = vector.broadcast %3 : vector<1x128xf32> to vector<64x128xf32>
    %5 = arith.addf %2, %4 : vector<64x128xf32>
    %cst_5 = arith.constant 0.000000e+00 : f32
    %6 = vector.broadcast %cst_5 : f32 to vector<64x128xf32>
    %7 = arith.maximumf %5, %6 : vector<64x128xf32>
    %8 = vector.shape_cast %7 : vector<64x128xf32> to vector<8x8x128xf32>
    %cst_6 = arith.constant dense<0xFF800000> : vector<8x128xf32>
    %9 = vector.multi_reduction <maximumf>, %8, %cst_6 [1] : vector<8x8x128xf32> to vector<8x128xf32>
    %c0_7 = arith.constant 0 : index
    %c0_8 = arith.constant 0 : index
    %10 = vector.load %arg4[%c0_7, %c0_8] : memref<128x128xf32, #tpu.memory_space<vmem>>, vector<128x128xf32>
    %cst_9 = arith.constant dense<0.000000e+00> : vector<8x128xf32>
    %11 = tpu.matmul %9, %10, %cst_9 {dimension_numbers = #tpu.dot_dimension_numbers<[1], [0], [0], [1], [0, 0, 1, 1], [], []>} : vector<8x128xf32>, vector<128x128xf32>, vector<8x128xf32> -> vector<8x128xf32>
    %c0_10 = arith.constant 0 : index
    %c0_11 = arith.constant 0 : index
    %12 = vector.load %arg5[%c0_10, %c0_11] : memref<1x128xf32, #tpu.memory_space<vmem>>, vector<1x128xf32>
    %13 = vector.broadcast %12 : vector<1x128xf32> to vector<8x128xf32>
    %14 = arith.addf %11, %13 : vector<8x128xf32>
    %c0_12 = arith.constant 0 : index
    %c0_13 = arith.constant 0 : index
    %15 = vector.load %arg6[%c0_12, %c0_13] : memref<8x128xf32, #tpu.memory_space<vmem>>, vector<8x128xf32>
    tpu.vector_store %arg6[%c0_12, %c0_13], %14 {strides = array<i32>} : memref<8x128xf32, #tpu.memory_space<vmem>>, vector<8x128xf32>,
    return
  }
  func.func @transform_0(%arg0: i32) -> (i32, i32) {
    %c0_i32 = arith.constant 0 : i32
    %c0_i32_0 = arith.constant 0 : i32
    return %arg0, %c0_i32 : i32, i32
  }
  func.func @transform_1(%arg0: i32) -> (i32, i32) {
    %c0_i32 = arith.constant 0 : i32
    %c0_i32_0 = arith.constant 0 : i32
    %c0_i32_1 = arith.constant 0 : i32
    return %c0_i32, %c0_i32_0 : i32, i32
  }
  func.func @transform_2(%arg0: i32) -> (i32, i32) {
    %c0_i32 = arith.constant 0 : i32
    %c0_i32_0 = arith.constant 0 : i32
    %c0_i32_1 = arith.constant 0 : i32
    return %c0_i32, %c0_i32_0 : i32, i32
  }
  func.func @transform_3(%arg0: i32) -> (i32, i32) {
    %c0_i32 = arith.constant 0 : i32
    %c0_i32_0 = arith.constant 0 : i32
    %c0_i32_1 = arith.constant 0 : i32
    return %c0_i32, %c0_i32_0 : i32, i32
  }
  func.func @transform_4(%arg0: i32) -> (i32, i32) {
    %c0_i32 = arith.constant 0 : i32
    %c0_i32_0 = arith.constant 0 : i32
    %c0_i32_1 = arith.constant 0 : i32
    return %c0_i32, %c0_i32_0 : i32, i32
  }
  func.func @transform_5(%arg0: i32) -> (i32, i32) {
    %c0_i32 = arith.constant 0 : i32
    %c0_i32_0 = arith.constant 0 : i32
    return %arg0, %c0_i32 : i32, i32
  }
}

</mosaic_0001>

<bundles_post_ra>
// kernel: tpu_custom_call.1
= control target key start
LH: loop header
LB: loop body
LE: loop exit
PB: predicated region body
PF: predicated region fallthrough
CT: control target
= control target key end

     0   :  { %10 = vsyncpa [#allocation3], 0  ;;  %s471_s0 = inlined_call_operand.hbm [shape: f32[64,128], index: 0, kind: input, shape index: {}]   ;;  %s472_s1 = inlined_call_operand.hbm [shape: f32[128,128], index: 1, kind: input, shape index: {}]   ;;  %s473_s2 = inlined_call_operand.vmem [shape: f32[1,128], index: 2, kind: input, shape index: {}]   ;;  %s474_s3 = inlined_call_operand.hbm [shape: f32[128,128], index: 3, kind: input, shape index: {}]   ;;  %s475_s4 = inlined_call_operand.vmem [shape: f32[1,128], index: 4, kind: input, shape index: {}]   ;;  %s476_s5 = inlined_call_operand.hbm [shape: f32[8,128], index: 5, kind: output, shape index: {}]  }
   0x1   :  { %11 = vsyncpa [#allocation6], 0 }
   0x2   :  { %12 = vsyncpa [#allocation4], 0  ;;  %s30_s20 = sshll.u32 %s472_s1, 4  ;;  %s417_s21 = smov [#allocation5]   ;;  %s31_s20 = int_to_ptr.hbm [resolvable:$true] %s30_s20 }
   0x3   :  { %s32_s22 = sshll.u32 %s417_s21, 4  ;;  %s17_s25 = sshll.u32 %s471_s0, 4  ;;  %s33_s22 = int_to_ptr.vmem [resolvable:$true] %s32_s22  ;;  %s18_s25 = int_to_ptr.hbm [resolvable:$true] %s17_s25 }
   0x4   :  { %s418_s26 = smov 128   ;;  %s419_s27 = smov 8  }
   0x5   :  { %38 = dma.hbm_to_vmem [thread:$0]  %s31_s20, 2048, %s33_s22, [#allocation6], %s418_s26, %s418_s26, %s419_s27  }
   0x6   :  { %s420_s28 = smov [#allocation2]   ;;  %s45_s7 = sshll.u32 %s474_s3, 4  ;;  %s46_s7 = int_to_ptr.hbm [resolvable:$true] %s45_s7 }
   0x7   :  { %s19_s29 = sshll.u32 %s420_s28, 4  ;;  %s421_s1 = smov [#allocation7]   ;;  %s20_s29 = int_to_ptr.vmem [resolvable:$true] %s19_s29 }
   0x8   :  { %25 = dma.hbm_to_vmem [thread:$0]  %s18_s25, 1024, %s20_s29, [#allocation3], %s418_s26, %s418_s26, %s419_s27  }
   0x9   :  { %s47_s8 = sshll.u32 %s421_s1, 4  ;;  %s48_s8 = int_to_ptr.vmem [resolvable:$true] %s47_s8 }
   0xa   :  { %53 = dma.hbm_to_vmem [thread:$0]  %s46_s7, 2048, %s48_s8, [#allocation6], %s418_s26, %s418_s26, %s419_s27  }
   0xb   :  { %411 = dma.done.wait [#allocation3], 1024  }
   0xc   :  { %412 = vsyncadd [#allocation3], 4294966272 }
   0xd   :  { %413 = dma.done.wait [#allocation6], 4096  }
   0xe   :  { %414 = vsyncadd [#allocation6], 4294963200  ;;  %v91_v0 = vld [vmem:[#allocation5 + $0x78] sm:$0xff]  ;;  %v90_v1 = vld [vmem:[#allocation5 + $0x70] sm:$0xff]  ;;  %vm221_vm0 = vcmask 1041409   ;;  %vm223_vm1 = vcmask 1042434  }
   0xf   :  { %96 = vmatpush.msra.mxu0 %v91_v0  ;;  %275 = vmatpush.msra.mxu2 %v91_v0  ;;  %v89_v2 = vld [vmem:[#allocation5 + $0x68] sm:$0xff]  ;;  %v88_v3 = vld [vmem:[#allocation5 + $0x60] sm:$0xff]  ;;  %v87_v4 = vld [vmem:[#allocation5 + $0x58] sm:$0xff]  ;;  %vm225_vm2 = vcmask 1043459   ;;  %vm227_vm3 = vcmask 1044484   ;;  %vm229_vm4 = vcmask 1045509  }
  0x10   :  { %276 = vmatpush.msra.mxu3 %v91_v0  ;;  %v86_v5 = vld [vmem:[#allocation5 + $0x50] sm:$0xff]  ;;  %v85_v6 = vld [vmem:[#allocation5 + $0x48] sm:$0xff]  ;;  %v84_v7 = vld [vmem:[#allocation5 + $0x40] sm:$0xff]  ;;  %vm231_vm5 = vcmask 1046534   ;;  %vm233_vm6 = vcmask 1047559   ;;  %s422_s10 = smov [#allocation8]  }
  0x11   :  { %97 = vmatpush.msra.mxu0 %v90_v1  ;;  %277 = vmatpush.msra.mxu2 %v90_v1  ;;  %v83_v8 = vld [vmem:[#allocation5 + $0x38] sm:$0xff]  ;;  %v82_v9 = vld [vmem:[#allocation5 + $0x30] sm:$0xff]  ;;  %v81_v10 = vld [vmem:[#allocation5 + $0x28] sm:$0xff]  ;;  %s262_s11 = sshll.u32 %s422_s10, 4  ;;  %s264_s14 = sshll.u32 %s476_s5, 4  ;;  %s263_s11 = int_to_ptr.vmem [resolvable:$true] %s262_s11  ;;  %s265_s14 = int_to_ptr.hbm [resolvable:$true] %s264_s14 }
  0x12   :  { %278 = vmatpush.msra.mxu3 %v90_v1  ;;  %v80_v11 = vld [vmem:[#allocation5 + $0x20] sm:$0xff]  ;;  %v79_v12 = vld [vmem:[#allocation5 + $0x18] sm:$0xff]  ;;  %v78_v13 = vld [vmem:[#allocation5 + $0x10] sm:$0xff] }
  0x13   :  { %98 = vmatpush.msra.mxu0 %v89_v2  ;;  %279 = vmatpush.msra.mxu2 %v89_v2  ;;  %v77_v14 = vld [vmem:[#allocation5 + $0x8] sm:$0xff]  ;;  %v76_v15 = vld [vmem:[#allocation5] sm:$0xff]  ;;  %v70_v17 = vld [vmem:[#allocation2 + $0x10] sm:$0xff] }
  0x14   :  { %280 = vmatpush.msra.mxu3 %v89_v2  ;;  %v68_v16 = vld [vmem:[#allocation2] sm:$0xff]  ;;  %v73_v18 = vld [vmem:[#allocation2 + $0x28] sm:$0xff]  ;;  %v71_v20 = vld [vmem:[#allocation2 + $0x18] sm:$0xff] }
  0x15   :  { %99 = vmatpush.msra.mxu0 %v88_v3  ;;  %281 = vmatpush.msra.mxu2 %v88_v3  ;;  %v69_v19 = vld [vmem:[#allocation2 + $0x8] sm:$0xff]  ;;  %v74_v21 = vld [vmem:[#allocation2 + $0x30] sm:$0xff]  ;;  %v72_v22 = vld [vmem:[#allocation2 + $0x20] sm:$0xff] }
  0x16   :  { %282 = vmatpush.msra.mxu3 %v88_v3  ;;  %v75_v23 = vld [vmem:[#allocation2 + $0x38] sm:$0xff]  ;;  %v207_v25 = vld [vmem:[#allocation7 + $0x70] sm:$0xff]  ;;  %v206_v26 = vld [vmem:[#allocation7 + $0x68] sm:$0xff] }
  0x17   :  { %100 = vmatpush.msra.mxu0 %v87_v4  ;;  %283 = vmatpush.msra.mxu2 %v87_v4  ;;  %v208_v24 = vld [vmem:[#allocation7 + $0x78] sm:$0xff]  ;;  %v205_v27 = vld [vmem:[#allocation7 + $0x60] sm:$0xff]  ;;  %v203_v29 = vld [vmem:[#allocation7 + $0x50] sm:$0xff] }
  0x18   :  { %284 = vmatpush.msra.mxu3 %v87_v4  ;;  %236 = vmatpush.msra.mxu1 %v208_v24  ;;  %v204_v28 = vld [vmem:[#allocation7 + $0x58] sm:$0xff]  ;;  %v202_v30 = vld [vmem:[#allocation7 + $0x48] sm:$0xff]  ;;  %v201_v31 = vld [vmem:[#allocation7 + $0x40] sm:$0xff] }
  0x19   :  { %101 = vmatpush.msra.mxu0 %v86_v5  ;;  %285 = vmatpush.msra.mxu2 %v86_v5  ;;  %v200_v32 = vld [vmem:[#allocation7 + $0x38] sm:$0xff]  ;;  %v199_v33 = vld [vmem:[#allocation7 + $0x30] sm:$0xff]  ;;  %v198_v35 = vld [vmem:[#allocation7 + $0x28] sm:$0xff] }
  0x1a   :  { %286 = vmatpush.msra.mxu3 %v86_v5  ;;  %237 = vmatpush.msra.mxu1 %v207_v25  ;;  %v313_v36 = vld [vmem:[%s473_s2] ss:$0 sm:$0xff]  ;;  %v196_v38 = vld [vmem:[#allocation7 + $0x18] sm:$0xff]  ;;  %v195_v40 = vld [vmem:[#allocation7 + $0x10] sm:$0xff] }
  0x1b   :  { %102 = vmatpush.msra.mxu0 %v85_v6  ;;  %287 = vmatpush.msra.mxu2 %v85_v6  ;;  %v197_v37 = vld [vmem:[#allocation7 + $0x20] sm:$0xff]  ;;  %v194_v41 = vld [vmem:[#allocation7 + $0x8] sm:$0xff] }
  0x1c   :  { %288 = vmatpush.msra.mxu3 %v85_v6  ;;  %238 = vmatpush.msra.mxu1 %v206_v26  ;;  %v193_v46 = vld [vmem:[#allocation7] sm:$0xff] }
  0x1d   :  { %103 = vmatpush.msra.mxu0 %v84_v7  ;;  %289 = vmatpush.msra.mxu2 %v84_v7 }
  0x1e   :  { %290 = vmatpush.msra.mxu3 %v84_v7  ;;  %239 = vmatpush.msra.mxu1 %v205_v27 }
  0x1f   :  { %104 = vmatpush.msra.mxu0 %v83_v8  ;;  %291 = vmatpush.msra.mxu2 %v83_v8 }
  0x20   :  { %292 = vmatpush.msra.mxu3 %v83_v8  ;;  %240 = vmatpush.msra.mxu1 %v204_v28 }
  0x21   :  { %105 = vmatpush.msra.mxu0 %v82_v9  ;;  %293 = vmatpush.msra.mxu2 %v82_v9 }
  0x22   :  { %294 = vmatpush.msra.mxu3 %v82_v9  ;;  %241 = vmatpush.msra.mxu1 %v203_v29 }
  0x23   :  { %106 = vmatpush.msra.mxu0 %v81_v10  ;;  %295 = vmatpush.msra.mxu2 %v81_v10 }
  0x24   :  { %296 = vmatpush.msra.mxu3 %v81_v10  ;;  %242 = vmatpush.msra.mxu1 %v202_v30 }
  0x25   :  { %107 = vmatpush.msra.mxu0 %v80_v11  ;;  %297 = vmatpush.msra.mxu2 %v80_v11 }
  0x26   :  { %298 = vmatpush.msra.mxu3 %v80_v11  ;;  %243 = vmatpush.msra.mxu1 %v201_v31 }
  0x27   :  { %108 = vmatpush.msra.mxu0 %v79_v12  ;;  %299 = vmatpush.msra.mxu2 %v79_v12 }
  0x28   :  { %300 = vmatpush.msra.mxu3 %v79_v12  ;;  %244 = vmatpush.msra.mxu1 %v200_v32 }
  0x29   :  { %109 = vmatpush.msra.mxu0 %v78_v13  ;;  %301 = vmatpush.msra.mxu2 %v78_v13 }
  0x2a   :  { %302 = vmatpush.msra.mxu3 %v78_v13  ;;  %245 = vmatpush.msra.mxu1 %v199_v33 }
  0x2b   :  { %110 = vmatpush.msra.mxu0 %v77_v14  ;;  %303 = vmatpush.msra.mxu2 %v77_v14 }
  0x2c   :  { %304 = vmatpush.msra.mxu3 %v77_v14  ;;  %246 = vmatpush.msra.mxu1 %v198_v35 }
  0x2d   :  { %111 = vmatpush.msra.mxu0 %v76_v15  ;;  %305 = vmatpush.msra.mxu2 %v76_v15 }
  0x2e   :  { %306 = vmatpush.msra.mxu3 %v76_v15  ;;  %112 = vmatmul.f32.vlgmr.msra.gmra.mxu0 %v68_v16 }
  0x2f   :  { %118 = vmatmul.f32.vlgmr.msra.gmra.mxu2 %v70_v17  ;;  %127 = vmatmul.f32.vlgmr.msra.gmra.mxu3 %v73_v18 }
  0x30   :  { %247 = vmatpush.msra.mxu1 %v197_v37 }
  0x32   :  { %248 = vmatpush.msra.mxu1 %v196_v38 }
  0x34   :  { %249 = vmatpush.msra.mxu1 %v195_v40 }
  0x36   :  { %115 = vmatmul.f32.gmra.mxu0 %v69_v19  ;;  %250 = vmatpush.msra.mxu1 %v194_v41 }
  0x37   :  { %121 = vmatmul.f32.gmra.mxu2 %v71_v20  ;;  %130 = vmatmul.f32.gmra.mxu3 %v74_v21 }
  0x38   :  { %251 = vmatpush.msra.mxu1 %v193_v46 }
  0x3f   :  { %124 = vmatmul.f32.gmra.mxu2 %v72_v22  ;;  %133 = vmatmul.f32.gmra.mxu3 %v75_v23 }
  0xab   :  { %v113_v34 = vpop.f32.mrf.mxu0 }
  0xac   :  { %v114_v39 = vadd.f32 %v313_v36, %v113_v34 }
  0xae   :  { %v137_v47 = vmax.f32 %v114_v39, 0.0 }
  0xb0   :  { %v145_v52 = vrot.slane %v137_v47, 4 }
  0xb2   :  { %v119_v42 = vpop.f32.mrf.mxu2  ;;  %v128_v43 = vpop.f32.mrf.mxu3  ;;  %v146_v61 = vmax.f32 %v137_v47, %v145_v52 }
  0xb3   :  { %v120_v44 = vadd.f32 %v313_v36, %v119_v42  ;;  %v116_v45 = vpop.f32.mrf.mxu0  ;;  %v129_v50 = vadd.f32 %v313_v36, %v128_v43 }
  0xb4   :  { %v117_v48 = vadd.f32 %v313_v36, %v116_v45  ;;  %v147_v5 = vrot.slane %v146_v61, 2 }
  0xb5   :  { %v139_v49 = vmax.f32 %v120_v44, 0.0  ;;  %v142_v55 = vmax.f32 %v129_v50, 0.0 }
  0xb6   :  { %v138_v51 = vmax.f32 %v117_v48, 0.0  ;;  %v148_v16 = vmax.f32 %v146_v61, %v147_v5 }
  0xb7   :  { %v157_v54 = vrot.slane %v139_v49, 4  ;;  %v175_v1 = vrot.slane %v142_v55, 4 }
  0xb8   :  { %v151_v53 = vrot.slane %v138_v51, 4  ;;  %v149_v26 = vrot.slane %v148_v16, 1 }
  0xb9   :  { %v158_v0 = vmax.f32 %v139_v49, %v157_v54  ;;  %v176_v8 = vmax.f32 %v142_v55, %v175_v1 }
  0xba   :  { %v152_v56 = vmax.f32 %v138_v51, %v151_v53  ;;  %v122_v57 = vpop.f32.mrf.mxu2  ;;  %v131_v58 = vpop.f32.mrf.mxu3 }
  0xbb   :  { %v123_v59 = vadd.f32 %v313_v36, %v122_v57  ;;  %v132_v60 = vadd.f32 %v313_v36, %v131_v58  ;;  %v159_v7 = vrot.slane %v158_v0, 2  ;;  %v177_v19 = vrot.slane %v176_v8, 2 }
  0xbc   :  { %v153_v2 = vrot.slane %v152_v56, 2 }
  0xbd   :  { %v140_v62 = vmax.f32 %v123_v59, 0.0  ;;  %v143_v63 = vmax.f32 %v132_v60, 0.0  ;;  %v160_v22 = vmax.f32 %v158_v0, %v159_v7  ;;  %v178_v29 = vmax.f32 %v176_v8, %v177_v19 }
  0xbe   :  { %v154_v9 = vmax.f32 %v152_v56, %v153_v2  ;;  %v314_v56 = vld [vmem:[%s475_s4] ss:$0 sm:$0xff] }
  0xbf   :  { %v163_v3 = vrot.slane %v140_v62, 4  ;;  %v181_v4 = vrot.slane %v143_v63, 4  ;;  %v161_v32 = vrot.slane %v160_v22, 1  ;;  %v179_v39 = vrot.slane %v178_v29, 1 }
  0xc0   :  { %v155_v20 = vrot.slane %v154_v9, 1 }
  0xc1   :  { %v164_v6 = vmax.f32 %v140_v62, %v163_v3  ;;  %v182_v13 = vmax.f32 %v143_v63, %v181_v4  ;;  %v162_v42 = vmax.f32 %v160_v22, %v161_v32  ;;  %v180_v48 = vmax.f32 %v178_v29, %v179_v39 }
  0xc2   :  { %v125_v10 = vpop.f32.mrf.mxu2  ;;  %v134_v11 = vpop.f32.mrf.mxu3  ;;  %v156_v30 = vmax.f32 %v154_v9, %v155_v20 }
  0xc3   :  { %v165_v12 = vrot.slane %v164_v6, 2  ;;  %v126_v14 = vadd.f32 %v313_v36, %v125_v10  ;;  %v135_v15 = vadd.f32 %v313_v36, %v134_v11  ;;  %v183_v23 = vrot.slane %v182_v13, 2 }
  0xc4   :  { %v150_v36 = vmax.f32 %v148_v16, %v149_v26 }
  0xc5   :  { %v141_v17 = vmax.f32 %v126_v14, 0.0  ;;  %v144_v18 = vmax.f32 %v135_v15, 0.0  ;;  %v166_v21 = vmax.f32 %v164_v6, %v165_v12  ;;  %v184_v33 = vmax.f32 %v182_v13, %v183_v23 }
  0xc6   :  { %v222_v40 = vsel %vm221_vm0, %v156_v30, %v150_v36 }
  0xc7   :  { %v169_v24 = vrot.slane %v141_v17, 4  ;;  %v187_v25 = vrot.slane %v144_v18, 4  ;;  %v167_v31 = vrot.slane %v166_v21, 1  ;;  %v185_v43 = vrot.slane %v184_v33, 1 }
  0xc8   :  { %v224_v47 = vsel %vm223_vm1, %v162_v42, %v222_v40 }
  0xc9   :  { %v170_v27 = vmax.f32 %v141_v17, %v169_v24  ;;  %v188_v28 = vmax.f32 %v144_v18, %v187_v25  ;;  %v168_v41 = vmax.f32 %v166_v21, %v167_v31  ;;  %v186_v50 = vmax.f32 %v184_v33, %v185_v43 }
  0xcb   :  { %v171_v34 = vrot.slane %v170_v27, 2  ;;  %v189_v35 = vrot.slane %v188_v28, 2  ;;  %v226_v49 = vsel %vm225_vm2, %v168_v41, %v224_v47 }
  0xcd   :  { %v172_v37 = vmax.f32 %v170_v27, %v171_v34  ;;  %v190_v38 = vmax.f32 %v188_v28, %v189_v35 }
  0xcf   :  { %v173_v44 = vrot.slane %v172_v37, 1  ;;  %v191_v45 = vrot.slane %v190_v38, 1 }
  0xd1   :  { %v174_v46 = vmax.f32 %v172_v37, %v173_v44  ;;  %v192_v52 = vmax.f32 %v190_v38, %v191_v45 }
  0xd3   :  { %v228_v51 = vsel %vm227_vm3, %v174_v46, %v226_v49 }
  0xd4   :  { %v230_v53 = vsel %vm229_vm4, %v180_v48, %v228_v51 }
  0xd5   :  { %v232_v54 = vsel %vm231_vm5, %v186_v50, %v230_v53 }
  0xd6   :  { %v234_v55 = vsel %vm233_vm6, %v192_v52, %v232_v54 }
  0xd7   :  { %252 = vmatmul.f32.vlgmr.msra.gmra.mxu1 %v234_v55 }
 0x154   :  { %v253_v57 = vpop.f32.mrf.mxu1 }
 0x155   :  { %v254_v58 = vadd.f32 %v314_v56, %v253_v57 }
 0x157   :  { %256 = vst [vmem:[#allocation8] sm:$0xff] %v254_v58 }
 0x158   :  { %267 = dma.vmem_to_hbm [thread:$0]  %s263_s11, 128, %s265_s14, [#allocation4]  }
 0x159   :  { %415 = dma.done.wait [#allocation4], 128  }
 0x15a   :  { %416 = vsyncadd [#allocation4], 4294967168 }
 0x15b   :  { %272 = vsyncpa [#allocation3], 1 }
 0x15c   :  { %273 = vsyncpa [#allocation6], 1 }
 0x15d   :  { %274 = vsyncpa [#allocation4], 1 }

</bundles_post_ra>
